<compile_context>
chip_gen: v7x
topology: tpu7x:2x2x1
jax: 0.10.0
libtpu: 0.0.40
codegen_flags: <defaults>
</compile_context>

<pallas_src>
import functools

import jax
import jax.numpy as jnp
from jax import lax
from jax.experimental import pallas as pl
from jax.experimental.pallas import tpu as pltpu

BOS_TOKEN_ID = 0
EOS_TOKEN_ID = 1


# ----------------------------- small helpers ------------------------------------

def _compiler_params(dimension_semantics):
    # pltpu.CompilerParams on current JAX; fall back for older releases.
    cls = getattr(pltpu, "CompilerParams", None) or getattr(pltpu, "TPUCompilerParams", None)
    return cls(dimension_semantics=dimension_semantics) if cls is not None else None


def _round_up(x, m):
    return ((x + m - 1) // m) * m


def _pick_row_tile(rows, cap=512):
    """Largest multiple-of-8 row tile <= cap that divides `rows` (else the full extent)."""
    if rows <= cap:
        return rows
    t = cap - (cap % 8)
    while t >= 8:
        if rows % t == 0:
            return t
        t -= 8
    return rows


# ----------------------------- Pallas kernels ------------------------------------

def _encoder_kernel(x_ref, w_ref, b_ref, o_ref):
    # x: (TILE_M, H) bf16   w: (H, H) bf16   b: (1, H) f32  ->  tanh(x @ w + b) as bf16
    h = jnp.dot(x_ref[...], w_ref[...], preferred_element_type=jnp.float32)
    o_ref[...] = jnp.tanh(h + b_ref[...]).astype(o_ref.dtype)


def _decode_step_kernel(q_ref, enc_ref, mask_ref, wlm_ref,
                        logits_ref, lse_ref, tok_ref,
                        ctx_sc, m_sc, l_sc, amax_sc):
    # One greedy decode step, vocab-tiled:
    #   grid axis j walks V in TILE_V chunks ("arbitrary"); q/enc/mask stay resident,
    #   the bf16 (H, TILE_V) weight tile is streamed (double-buffered) per step.
    j = pl.program_id(0)
    nv = pl.num_programs(0)
    tile_v = wlm_ref.shape[1]

    @pl.when(j == 0)
    def _():
        # Cross-attention over the encoder states: computed once, context kept in VMEM.
        q = q_ref[...]                                   # (B, H)   bf16
        enc = enc_ref[...]                               # (B, S, H) bf16
        h_dim = q.shape[-1]
        # scores: batched (1 x H) . (S x H)^T on the MXU, f32 accumulation
        scores = jnp.einsum("bqh,bsh->bqs", q[:, None, :], enc,
                            preferred_element_type=jnp.float32)[:, 0, :]      # (B, S)
        scores = scores * (1.0 / float(h_dim) ** 0.5)
        scores = jnp.where(mask_ref[...] > 0.0, scores, -1e9)
        s_max = jnp.max(scores, axis=-1, keepdims=True)
        p = jnp.exp(scores - s_max)                                            # f32 (EUP)
        attn = p * pl.reciprocal(jnp.sum(p, axis=-1, keepdims=True), approx=True)
        # context: batched (1 x S) . (S x H) on the MXU
        ctx = jnp.einsum("bqs,bsh->bqh", attn[:, None, :].astype(jnp.bfloat16), enc,
                         preferred_element_type=jnp.float32)[:, 0, :]          # (B, H)
        ctx_sc[...] = ctx.astype(jnp.bfloat16)
        # online log-softmax / argmax accumulators
        m_sc[...] = jnp.full_like(m_sc, -jnp.inf)
        l_sc[...] = jnp.zeros_like(l_sc)
        amax_sc[...] = jnp.zeros_like(amax_sc)

    # --- LM head for this vocab tile (MXU, f32 accumulate) ---
    logits = jnp.dot(ctx_sc[...], wlm_ref[...],
                     preferred_element_type=jnp.float32)          # (B, TILE_V)
    logits_ref[...] = logits                                      # lane-dense tile writeback

    # --- online logsumexp across vocab tiles ---
    tile_max = jnp.max(logits, axis=-1, keepdims=True)            # (B, 1)
    m_prev = m_sc[...]
    m_new = jnp.maximum(m_prev, tile_max)
    l_sc[...] = (l_sc[...] * jnp.exp(m_prev - m_new)
                 + jnp.sum(jnp.exp(logits - m_new), axis=-1, keepdims=True))
    m_sc[...] = m_new

    # --- online first-occurrence argmax across vocab tiles ---
    idx = lax.broadcasted_iota(jnp.int32, logits.shape, 1)
    in_tile = jnp.min(jnp.where(logits == tile_max, idx, tile_v),
                      axis=-1, keepdims=True) + j * tile_v
    amax_sc[...] = jnp.where(tile_max > m_prev, in_tile, amax_sc[...])

    @pl.when(j == nv - 1)
    def _():
        lse = m_sc[...] + jnp.log(l_sc[...])                      # (B, 1)
        lse_ref[...] = jnp.broadcast_to(lse, lse_ref.shape)       # lane-dense outputs
        tok_ref[...] = jnp.broadcast_to(amax_sc[...], tok_ref.shape)


# ----------------------------- Pallas wrappers ------------------------------------

def pallas_encoder(emb, w_enc, b_enc):
    """emb: (B, S, H) bf16 -> last_hidden_state (B, S, H) bf16."""
    B, S, H = emb.shape
    rows = B * S
    x = emb.reshape(rows, H)
    tile_m = _pick_row_tile(rows)
    out = pl.pallas_call(
        _encoder_kernel,
        out_shape=jax.ShapeDtypeStruct((rows, H), jnp.bfloat16),
        grid=(rows // tile_m,),
        in_specs=[
            pl.BlockSpec((tile_m, H), lambda i: (i, 0)),
            pl.BlockSpec((H, H), lambda i: (0, 0)),
            pl.BlockSpec((1, H), lambda i: (0, 0)),
        ],
        out_specs=pl.BlockSpec((tile_m, H), lambda i: (i, 0)),
        compiler_params=_compiler_params(("parallel",)),
    )(x, w_enc, b_enc)
    return out.reshape(B, S, H)


def pallas_decode_step(q, enc, mask_f, w_lm, *, tile_v=128):
    """One greedy decoding step.  Returns (log_prob (B, V) f32, next_token (B,) int32).

    NOTE: tile_v=128 at toy sizes; for a real vocab size it to VMEM (e.g. bf16 H=1024,
    TILE_V=2048-4096; halve on v7x's 64 MiB VMEM and raise vmem_limit_bytes if needed).
    """
    B, S, H = enc.shape
    V = w_lm.shape[1]
    assert V % tile_v == 0 and tile_v % 128 == 0
    nv = V // tile_v

    logits, lse, tok = pl.pallas_call(
        _decode_step_kernel,
        out_shape=(
            jax.ShapeDtypeStruct((B, V), jnp.float32),    # raw logits (tiled writeback)
            jax.ShapeDtypeStruct((B, 128), jnp.float32),  # logsumexp (lane-dense)
            jax.ShapeDtypeStruct((B, 128), jnp.int32),    # argmax token (lane-dense)
        ),
        grid=(nv,),
        in_specs=[
            pl.BlockSpec((B, H), lambda j: (0, 0)),        # q: resident
            pl.BlockSpec((B, S, H), lambda j: (0, 0, 0)),  # enc: resident
            pl.BlockSpec((B, S), lambda j: (0, 0)),        # mask: resident
            pl.BlockSpec((H, tile_v), lambda j: (0, j)),   # w_lm: streamed per V tile
        ],
        out_specs=(
            pl.BlockSpec((B, tile_v), lambda j: (0, j)),
            pl.BlockSpec((B, 128), lambda j: (0, 0)),
            pl.BlockSpec((B, 128), lambda j: (0, 0)),
        ),
        scratch_shapes=[
            pltpu.VMEM((B, H), jnp.bfloat16),   # attention context
            pltpu.VMEM((B, 1), jnp.float32),    # running max
            pltpu.VMEM((B, 1), jnp.float32),    # running sum-exp
            pltpu.VMEM((B, 1), jnp.int32),      # running argmax
        ],
        compiler_params=_compiler_params(("arbitrary",)),
    )(q, enc, mask_f, w_lm)

    # LogSoftmax(-1) on the last position: logits - logsumexp (LSE reduced in-kernel).
    log_prob = logits - lse[:, :1]
    next_token = tok[:, 0]
    return log_prob, next_token


# ----------------------------- device-side greedy loop -----------------------------

@jax.jit
def _encode(tok_emb, w_enc, b_enc, input_doc):
    emb = jnp.take(tok_emb, input_doc, axis=0)            # (B, S, H) bf16
    return pallas_encoder(emb, w_enc, b_enc)


@functools.partial(jax.jit, static_argnames=("max_len", "eos_id"))
def _greedy_decode(dec_emb, w_lm, enc, mask_f, has_eos0, *, max_len, eos_id):
    """Greedy decoding entirely on device: lax.while_loop, no per-step host sync."""
    B_pad = enc.shape[0]
    V = w_lm.shape[1]
    dec_ids0 = jnp.full((B_pad, max_len), BOS_TOKEN_ID, jnp.int32)
    logprobs0 = jnp.zeros((max_len - 1, B_pad, V), jnp.float32)

    def cond(state):
        cur_len, _, has_eos, _ = state
        return jnp.logical_and(cur_len < max_len, jnp.logical_not(jnp.all(has_eos)))

    def body(state):
        cur_len, dec_ids, has_eos, logprobs = state
        last_tok = lax.dynamic_slice(dec_ids, (jnp.int32(0), cur_len - 1), (B_pad, 1))[:, 0]
        q = jnp.take(dec_emb, last_tok, axis=0)                       # (B_pad, H) bf16
        log_prob, next_tok = pallas_decode_step(q, enc, mask_f, w_lm)
        dec_ids = lax.dynamic_update_slice(dec_ids, next_tok[:, None],
                                           (jnp.int32(0), cur_len))
        logprobs = lax.dynamic_update_slice(logprobs, log_prob[None],
                                            (cur_len - 1, jnp.int32(0), jnp.int32(0)))
        has_eos = jnp.logical_or(has_eos, next_tok == eos_id)
        return (cur_len + 1, dec_ids, has_eos, logprobs)

    state0 = (jnp.int32(1), dec_ids0, has_eos0, logprobs0)
    cur_len, dec_ids, _, logprobs = lax.while_loop(cond, body, state0)
    return cur_len, dec_ids, logprobs


# ----------------------------- SumGen equivalent ------------------------------------

class SumGenPallas:
    def __init__(self, params, max_len=6, eos_token_id=EOS_TOKEN_ID):
        self.params = params
        self.max_len = max_len
        self.eos_token_id = eos_token_id

    def forward(self, input_doc, input_mask):
        B = input_doc.shape[0]

        # encoder_outputs = self.encoder(input_doc, attention_mask=input_mask)
        enc = _encode(self.params["tok_emb"], self.params["w_enc"],
                      self.params["b_enc"], input_doc)                 # (B, S, H) bf16

        # pad batch to a sublane-friendly multiple of 8; padded rows are masked out
        B_pad = _round_up(B, 8)
        pad = B_pad - B
        enc_p = jnp.pad(enc, ((0, pad), (0, 0), (0, 0)))
        mask_p = jnp.pad(input_mask.astype(jnp.float32), ((0, pad), (0, 0)))
        has_eos0 = jnp.arange(B_pad) >= B        # padded rows count as already finished

        cur_len, dec_ids, logprobs = _greedy_decode(
            self.params["dec_emb"], self.params["w_lm"], enc_p, mask_p, has_eos0,
            max_len=self.max_len, eos_id=self.eos_token_id)

        # single host sync at the very end (vs. one per step in the reference loop)
        n_steps = int(jax.device_get(cur_len)) - 1
        decoder_input_ids = dec_ids[:B, : n_steps + 1]
        step_log_probs = [logprobs[i, :B, :] for i in range(n_steps)]
        return decoder_input_ids, step_log_probs


# ----------------------------- main ------------------------------------

def _init_params(key, vocab, hidden):
    k1, k2, k3, k4, k5 = jax.random.split(key, 5)
    return {
        # weights / embeddings stored bf16 (halves HBM streaming); f32 accumulation in-kernel
        "tok_emb": (jax.random.normal(k1, (vocab, hidden), jnp.float32) * 0.1).astype(jnp.bfloat16),
        "dec_emb": (jax.random.normal(k2, (vocab, hidden), jnp.float32) * 0.1).astype(jnp.bfloat16),
        "w_enc": (jax.random.normal(k3, (hidden, hidden), jnp.float32) * 0.1).astype(jnp.bfloat16),
        "b_enc": jax.random.normal(k4, (1, hidden), jnp.float32) * 0.1,
        "w_lm": (jax.random.normal(k5, (hidden, vocab), jnp.float32) * 0.1).astype(jnp.bfloat16),
    }


if __name__ == "__main__":
    # lane-friendly toy sizes: H = 128 (full lane width), V = 512 (4 vocab tiles of 128)
    B, S, H, V = 2, 8, 128, 512
    key = jax.random.PRNGKey(0)
    kp, kd = jax.random.split(key)

    params = _init_params(kp, V, H)

    input_doc = jax.random.randint(kd, (B, S), minval=2, maxval=V, dtype=jnp.int32)
    input_mask = jnp.ones((B, S), dtype=jnp.int32)
    input_mask = input_mask.at[1, -2:].set(0)   # simulate padding on the second sequence

    model = SumGenPallas(params, max_len=6)
    decoder_input_ids, step_log_probs = model.forward(input_doc, input_mask)

    jax.block_until_ready(decoder_input_ids)
    for lp in step_log_probs:
        jax.block_until_ready(lp)

    print("KERNEL_OK")
</pallas_src>

<mosaic_0001>
module attributes {stable_mosaic.version = 11 : i64} {
  func.func @_encoder_kernel(%arg0: i32, %arg1: memref<16x128xbf16, #tpu.memory_space<vmem>>, %arg2: memref<128x128xbf16, #tpu.memory_space<vmem>>, %arg3: memref<1x128xf32, #tpu.memory_space<vmem>>, %arg4: memref<16x128xbf16, #tpu.memory_space<vmem>>) attributes {dimension_semantics = [#tpu.dimension_semantics<parallel>], iteration_bounds = array<i64: 1>, scalar_prefetch = 0 : i64, scratch_operands = 0 : i64, tpu.core_type = #tpu.core_type<tc>, window_params = [{transform_indices = @transform_0, window_bounds = array<i64: 16, 128>}, {pipeline_mode = #tpu.pipeline_mode<synchronous>, transform_indices = @transform_1, window_bounds = array<i64: 128, 128>}, {pipeline_mode = #tpu.pipeline_mode<synchronous>, transform_indices = @transform_2, window_bounds = array<i64: 1, 128>}, {transform_indices = @transform_3, window_bounds = array<i64: 16, 128>}]} {
    %c0 = arith.constant 0 : index
    %c0_0 = arith.constant 0 : index
    %0 = vector.load %arg1[%c0, %c0_0] : memref<16x128xbf16, #tpu.memory_space<vmem>>, vector<16x128xbf16>
    %c0_1 = arith.constant 0 : index
    %c0_2 = arith.constant 0 : index
    %1 = vector.load %arg2[%c0_1, %c0_2] : memref<128x128xbf16, #tpu.memory_space<vmem>>, vector<128x128xbf16>
    %cst = arith.constant dense<0.000000e+00> : vector<16x128xf32>
    %2 = tpu.matmul %0, %1, %cst {dimension_numbers = #tpu.dot_dimension_numbers<[1], [0], [0], [1], [0, 0, 1, 1], [], []>} : vector<16x128xbf16>, vector<128x128xbf16>, vector<16x128xf32> -> vector<16x128xf32>
    %c0_3 = arith.constant 0 : index
    %c0_4 = arith.constant 0 : index
    %3 = vector.load %arg3[%c0_3, %c0_4] : memref<1x128xf32, #tpu.memory_space<vmem>>, vector<1x128xf32>
    %4 = vector.broadcast %3 : vector<1x128xf32> to vector<16x128xf32>
    %5 = arith.addf %2, %4 : vector<16x128xf32>
    %6 = math.tanh %5 : vector<16x128xf32>
    %7 = arith.truncf %6 : vector<16x128xf32> to vector<16x128xbf16>
    %c0_5 = arith.constant 0 : index
    %c0_6 = arith.constant 0 : index
    %8 = vector.load %arg4[%c0_5, %c0_6] : memref<16x128xbf16, #tpu.memory_space<vmem>>, vector<16x128xbf16>
    tpu.vector_store %arg4[%c0_5, %c0_6], %7 {strides = array<i32>} : memref<16x128xbf16, #tpu.memory_space<vmem>>, vector<16x128xbf16>,
    return
  }
  func.func @transform_0(%arg0: i32) -> (i32, i32) {
    %c0_i32 = arith.constant 0 : i32
    %c0_i32_0 = arith.constant 0 : i32
    return %arg0, %c0_i32 : i32, i32
  }
  func.func @transform_1(%arg0: i32) -> (i32, i32) {
    %c0_i32 = arith.constant 0 : i32
    %c0_i32_0 = arith.constant 0 : i32
    %c0_i32_1 = arith.constant 0 : i32
    return %c0_i32, %c0_i32_0 : i32, i32
  }
  func.func @transform_2(%arg0: i32) -> (i32, i32) {
    %c0_i32 = arith.constant 0 : i32
    %c0_i32_0 = arith.constant 0 : i32
    %c0_i32_1 = arith.constant 0 : i32
    return %c0_i32, %c0_i32_0 : i32, i32
  }
  func.func @transform_3(%arg0: i32) -> (i32, i32) {
    %c0_i32 = arith.constant 0 : i32
    %c0_i32_0 = arith.constant 0 : i32
    return %arg0, %c0_i32 : i32, i32
  }
}

</mosaic_0001>

<bundles_post_ra>
// kernel: _encode.1
= control target key start
LH: loop header
LB: loop body
LE: loop exit
PB: predicated region body
PF: predicated region fallthrough
CT: control target
= control target key end

     0   :  { %v254_v1 = vmov 0.0   ;;  %vm255_vm0 = vmmov 0   ;;  %s321_s0 = inlined_call_operand.vmem [shape: bf16[16,128], index: 0, kind: input, shape index: {}]   ;;  %s322_s1 = inlined_call_operand.vmem [shape: bf16[128,128], index: 1, kind: input, shape index: {}]   ;;  %s323_s2 = inlined_call_operand.vmem [shape: f32[1,128], index: 2, kind: input, shape index: {}]   ;;  %s324_s3 = inlined_call_operand.hbm [shape: bf16[16,128], index: 3, kind: output, shape index: {}]  }
   0x1   :  { %v217_v0 = vld [vmem:[%s322_s1] sm:$0xff]   ;;  %192 = vmatprep.subr.bf16.mxu0 %v254_v1  ;;  %v218_v2 = vld [vmem:[%s322_s1 + $0x8] sm:$0xff]   ;;  %208 = vmatprep.mubr.msk.bf16.mxu0 %vm255_vm0, %v254_v1  ;;  %v219_v3 = vld [vmem:[%s322_s1 + $0x10] sm:$0xff]  }
   0x2   :  { %193 = vmatpush3.bf16.msra.mxu0 %v217_v0 }
   0x3   :  { %194 = vmatprep.subr.bf16.mxu0 %v254_v1 }
   0x6   :  { %195 = vmatpush3.bf16.msra.mxu0 %v218_v2 }
   0x7   :  { %196 = vmatprep.subr.bf16.mxu0 %v254_v1 }
   0x8   :  { %8 = vsyncpa [#allocation3], 0  ;;  %v220_v4 = vld [vmem:[%s322_s1 + $0x18] sm:$0xff]   ;;  %v221_v5 = vld [vmem:[%s322_s1 + $0x20] sm:$0xff]  }
   0x9   :  { %v222_v6 = vld [vmem:[%s322_s1 + $0x28] sm:$0xff]   ;;  %v223_v7 = vld [vmem:[%s322_s1 + $0x30] sm:$0xff]   ;;  %v224_v8 = vld [vmem:[%s322_s1 + $0x38] sm:$0xff]   ;;  %s256_s1 = smov [#allocation2]  }
   0xa   :  { %197 = vmatpush3.bf16.msra.mxu0 %v219_v3  ;;  %v225_v9 = vld [vmem:[%s321_s0] sm:$0xff]   ;;  %s153_s5 = sshll.u32 %s256_s1, 4  ;;  %s154_s5 = int_to_ptr.vmem [resolvable:$true] %s153_s5 }
   0xb   :  { %198 = vmatprep.subr.bf16.mxu0 %v254_v1  ;;  %v164_v10 = vld [vmem:[%s323_s2] ss:$0 sm:$0xff]  ;;  %s230_s0 = scalar_lea.vmem %s154_s5, 128  ;;  %p235_p1 = scmp.lt.s32.totalorder %s154_s5, %s154_s5 }
   0xc   :  { %p231_p0 = scmp.ne.s32.totalorder %s154_s5, %s230_s0  ;;  %p236_p2 = scmp.lt.s32.totalorder %s230_s0, %s230_s0 }
   0xe   :  { %199 = vmatpush3.bf16.msra.mxu0 %v220_v4  ;;  %p237_p3 = por %p236_p2, %p235_p1 }
   0xf   :  { %200 = vmatprep.subr.bf16.mxu0 %v254_v1 }
  0x10   :  { %p238_p4 = pnand %p237_p3, %p231_p0 }
  0x12   :  { %201 = vmatpush3.bf16.msra.mxu0 %v221_v5 }
  0x13   :  { %202 = vmatprep.subr.bf16.mxu0 %v254_v1 }
  0x16   :  { %203 = vmatpush3.bf16.msra.mxu0 %v222_v6 }
  0x17   :  { %204 = vmatprep.subr.bf16.mxu0 %v254_v1 }
  0x1a   :  { %205 = vmatpush3.bf16.msra.mxu0 %v223_v7 }
  0x1b   :  { %206 = vmatprep.subr.bf16.mxu0 %v254_v1 }
  0x1e   :  { %207 = vmatpush3.bf16.msra.mxu0 %v224_v8 }
  0x21   :  { %209 = vmatmul.mubr.bf16.vlgmr.msra.gmra.mrb[0].mxu0 %v225_v9 }
  0xf4   :  { %v129_v11 = vpop.f32.mrb[0].mxu0 }
  0xf5   :  { %v130_v12 = vadd.f32 %v164_v10, %v129_v11  ;;  %v210_v13 = vpop.f32.mrb[1].mxu0 }
  0xf6   :  { %v132_v14 = vpop.f32.mrb[2].mxu0 }
  0xf7   :  { %v133_v15 = vadd.f32 %v164_v10, %v132_v14  ;;  %v211_v16 = vpop.f32.mrb[3].mxu0  ;;  %226 = vtanh.f32 %v130_v12 }
  0xf9   :  { %228 = vtanh.f32 %v133_v15 }
 0x101   :  { %v227_v17 = vpop.eup %226 }
 0x103   :  { %v229_v18 = vpop.eup %228 }
 0x104   :  { %v181_v19 = vpack.c.bf16 %v229_v18, %v227_v17 }
 0x106   :  { %182 = vst [vmem:[#allocation2] sm:$0xff] %v181_v19  }
 0x107   :  { %241 = shalt.err (!%p238_p4)
}
 0x108   :  { %s242_s7 = scalar_lea.hbm %s324_s3, 128 }
 0x109   :  { %p243_p5 = scmp.ne.s32.totalorder %s324_s3, %s242_s7  ;;  %p246_p6 = scmp.lt.u32.totalorder %s242_s7, %s324_s3 }
 0x10b   :  { %p248_p7 = pnand %p246_p6, %p243_p5 }
 0x10d   :  { %251 = shalt.err (!%p248_p7)
}
 0x10e   :  { %s257_s12 = smov 64   ;;  %s258_s13 = smov 4  }
 0x10f   :  { %159 = dma.vmem_to_hbm [thread:$0]  %s154_s5, 128, %s324_s3, [#allocation3], %s257_s12, %s257_s12, %s258_s13  }
 0x110   :  { %252 = dma.done.wait [#allocation3], 128  }
 0x111   :  { %253 = vsyncadd [#allocation3], 4294967168 }
 0x112   :  { %163 = vsyncpa [#allocation3], 1 }

</bundles_post_ra>
